<compile_context>
chip_gen: v5e
topology: v5e:2x2
jax: 0.10.0
libtpu: 0.0.40
codegen_flags: <defaults>
</compile_context>

<pallas_src>
import functools

import jax
import jax.numpy as jnp
from jax.experimental import pallas as pl
from jax.experimental.pallas import tpu as pltpu

H_ACTOR, H_CRITIC = 200, 100
C1_OFF = 256            # lane-tile-aligned start of the critic trunk columns
TRUNK_W = 384           # fused trunk width (3 lane tiles of 128)
ONE_COL = TRUNK_W - 1   # constant-1 lane carrying second-layer biases
OUT_W = 128             # packed, lane-dense output width


def _round_up(n, m):
    return ((n + m - 1) // m) * m


def net_kernel(x_ref, w1_ref, w2_ref, out_ref, *, a_dim, bf16_heads):
    # Layer 1 (+ bias via the ones column already packed into x): one MXU pass,
    # no ref slicing, no broadcast add.
    trunk = jnp.dot(x_ref[...], w1_ref[...],
                    preferred_element_type=jnp.float32)       # (bb, 384)
    trunk = jnp.clip(trunk, 0.0, 6.0)                         # fused relu6

    # Layer 2: fused mu / sigma / value heads in a single MXU tile. Biases come
    # in via the constant-1 lane (exact under bf16: 1.0 is representable).
    w2 = w2_ref[...]
    if bf16_heads:
        trunk = trunk.astype(jnp.bfloat16)
        w2 = w2.astype(jnp.bfloat16)
    heads = jnp.dot(trunk, w2, preferred_element_type=jnp.float32)  # (bb, 128)

    # (1, OUT_W) lane index; jnp.where broadcasts it over the batch block.
    lane = jax.lax.broadcasted_iota(jnp.int32, (1, OUT_W), 1)
    mu = 2.0 * jnp.tanh(heads)
    # numerically stable softplus: max(z,0) + log1p(exp(-|z|))
    sigma = jnp.maximum(heads, 0.0) + jnp.log1p(jnp.exp(-jnp.abs(heads))) + 0.001

    # Single full-width lane-dense store:
    #   lanes [0, a) = mu, [a, 2a) = sigma, lane 2a = values,
    #   lanes > 2a = heads (zero because those W2p columns are zero-packed).
    out_ref[...] = jnp.where(lane < a_dim, mu,
                             jnp.where(lane < 2 * a_dim, sigma, heads))


def pack_params(p, s_dim, a_dim):
    """Pack the 10 PyTorch-style tensors into two lane-aligned weight slabs.

    W1p row layout: rows 0:s_dim = weights, row s_dim = layer-1 biases (paired
    with the ones column appended to x), rows above = zero padding so the
    contraction dim is a multiple of 8.
    """
    assert 2 * a_dim + 1 <= OUT_W, "a_dim too large for 128-lane packed output"
    s_pad = _round_up(s_dim + 1, 8)

    w1 = jnp.zeros((s_pad, TRUNK_W), jnp.float32)
    w1 = w1.at[:s_dim, 0:H_ACTOR].set(p["wa1"])
    w1 = w1.at[:s_dim, C1_OFF:C1_OFF + H_CRITIC].set(p["wc1"])
    w1 = w1.at[s_dim, 0:H_ACTOR].set(p["ba1"])
    w1 = w1.at[s_dim, C1_OFF:C1_OFF + H_CRITIC].set(p["bc1"])
    # Constant-1 lane: this W1p column MUST stay zero except for this bias
    # entry, otherwise all second-layer biases get corrupted.
    w1 = w1.at[s_dim, ONE_COL].set(1.0)

    w2 = jnp.zeros((TRUNK_W, OUT_W), jnp.float32)
    w2 = w2.at[0:H_ACTOR, 0:a_dim].set(p["wmu"])
    w2 = w2.at[0:H_ACTOR, a_dim:2 * a_dim].set(p["wsg"])
    w2 = w2.at[C1_OFF:C1_OFF + H_CRITIC, 2 * a_dim].set(p["wv"].reshape(-1))
    w2 = w2.at[ONE_COL, 0:a_dim].set(p["bmu"])
    w2 = w2.at[ONE_COL, a_dim:2 * a_dim].set(p["bsg"])
    w2 = w2.at[ONE_COL, 2 * a_dim].set(p["bv"].reshape(()))
    return w1, w2


def _pick_block(B):
    """Batch block size: whole-block for small B, otherwise the largest
    multiple-of-8 divisor of B that is <= 1024 AND yields >= 2 grid steps
    (so v7x's two TensorCores both get work)."""
    if B <= 512:
        return B
    cap = min(1024, B // 2)
    cap -= cap % 8
    for bb in range(cap, 0, -8):
        if B % bb == 0:
            return bb
    return B  # awkward batch size: single big unblocked step


def net_forward(x, w1p, w2p, *, a_dim, bf16_heads=False):
    """x: (B, s_dim) f32; w1p/w2p from pack_params. Returns (mu, sigma, values)."""
    B, s_dim = x.shape
    s_pad = w1p.shape[0]
    assert w1p.shape == (s_pad, TRUNK_W) and w2p.shape == (TRUNK_W, OUT_W)
    assert s_pad >= s_dim + 1

    # Fold the layer-1 bias into the matmul: append a ones column and zero-pad
    # the contraction dim to a multiple of 8 (done once per call, outside the
    # grid loop).
    x_aug = jnp.zeros((B, s_pad), jnp.float32)
    x_aug = x_aug.at[:, :s_dim].set(x.astype(jnp.float32))
    x_aug = x_aug.at[:, s_dim].set(1.0)

    bb = _pick_block(B)
    grid = (B // bb,)

    kernel = functools.partial(net_kernel, a_dim=a_dim, bf16_heads=bf16_heads)

    cost = pl.CostEstimate(
        flops=2 * B * (s_pad * TRUNK_W + TRUNK_W * OUT_W),
        transcendentals=3 * B * OUT_W,
        bytes_accessed=4 * (x_aug.size + w1p.size + w2p.size + B * OUT_W),
    )

    out = pl.pallas_call(
        kernel,
        out_shape=jax.ShapeDtypeStruct((B, OUT_W), jnp.float32),
        grid_spec=pltpu.PrefetchScalarGridSpec(
            num_scalar_prefetch=0,
            grid=grid,
            in_specs=[
                pl.BlockSpec((bb, s_pad), lambda i: (i, 0)),
                pl.BlockSpec((s_pad, TRUNK_W), lambda i: (0, 0)),   # resident
                pl.BlockSpec((TRUNK_W, OUT_W), lambda i: (0, 0)),   # resident
            ],
            out_specs=pl.BlockSpec((bb, OUT_W), lambda i: (i, 0)),
        ),
        compiler_params=pltpu.CompilerParams(
            dimension_semantics=("parallel",)),
        cost_estimate=cost,
    )(x_aug, w1p, w2p)

    mu = out[:, :a_dim]
    sigma = out[:, a_dim:2 * a_dim]
    values = out[:, 2 * a_dim:2 * a_dim + 1]
    return mu, sigma, values


def init_params(key, s_dim, a_dim):
    """Weights ~ N(0, 0.1) like set_init; biases random here to exercise the
    bias-folding paths (set_init uses zeros, forward semantics are unchanged)."""
    ks = jax.random.split(key, 10)
    w = lambda k, fin, fout: jax.random.normal(k, (fin, fout), jnp.float32) * 0.1
    b = lambda k, n: jax.random.normal(k, (n,), jnp.float32) * 0.1
    return {
        "wa1": w(ks[0], s_dim, H_ACTOR), "ba1": b(ks[5], H_ACTOR),
        "wmu": w(ks[1], H_ACTOR, a_dim), "bmu": b(ks[6], a_dim),
        "wsg": w(ks[2], H_ACTOR, a_dim), "bsg": b(ks[7], a_dim),
        "wc1": w(ks[3], s_dim, H_CRITIC), "bc1": b(ks[8], H_CRITIC),
        "wv":  w(ks[4], H_CRITIC, 1),     "bv":  b(ks[9], 1),
    }


def reference_forward(x, p):
    """Plain-JAX reference (unpacked params) for verification."""
    a1 = jnp.clip(x @ p["wa1"] + p["ba1"], 0.0, 6.0)
    mu = 2.0 * jnp.tanh(a1 @ p["wmu"] + p["bmu"])
    sigma = jax.nn.softplus(a1 @ p["wsg"] + p["bsg"]) + 0.001
    c1 = jnp.clip(x @ p["wc1"] + p["bc1"], 0.0, 6.0)
    values = c1 @ p["wv"] + p["bv"]
    return mu, sigma, values


# TODO(synk): choose_action (Normal sampling) and loss_func are host-side /
# training utilities outside Net.forward and are not implemented as kernels.

if __name__ == "__main__":
    key = jax.random.PRNGKey(0)
    k_param, k_x = jax.random.split(key)

    B, S_DIM, A_DIM = 8, 16, 4
    params = init_params(k_param, S_DIM, A_DIM)
    w1p, w2p = pack_params(params, S_DIM, A_DIM)
    x = jax.random.normal(k_x, (B, S_DIM), dtype=jnp.float32)

    mu, sigma, values = net_forward(x, w1p, w2p, a_dim=A_DIM)
    jax.block_until_ready((mu, sigma, values))

    mu_r, sigma_r, values_r = reference_forward(x, params)
    assert mu.shape == (B, A_DIM) and sigma.shape == (B, A_DIM) and values.shape == (B, 1)
    assert jnp.allclose(mu, mu_r, atol=3e-5), "mu mismatch"
    assert jnp.allclose(sigma, sigma_r, atol=3e-5), "sigma mismatch"
    assert jnp.allclose(values, values_r, atol=3e-5), "values mismatch"

    print("KERNEL_OK")
</pallas_src>

<mosaic_0001>
module attributes {stable_mosaic.version = 11 : i64} {
  func.func @net_kernel(%arg0: i32, %arg1: memref<8x24xf32, #tpu.memory_space<vmem>>, %arg2: memref<24x384xf32, #tpu.memory_space<vmem>>, %arg3: memref<384x128xf32, #tpu.memory_space<vmem>>, %arg4: memref<8x128xf32, #tpu.memory_space<vmem>>) attributes {dimension_semantics = [#tpu.dimension_semantics<parallel>], iteration_bounds = array<i64: 1>, scalar_prefetch = 0 : i64, scratch_operands = 0 : i64, tpu.core_type = #tpu.core_type<tc>, window_params = [{transform_indices = @transform_0, window_bounds = array<i64: 8, 24>}, {pipeline_mode = #tpu.pipeline_mode<synchronous>, transform_indices = @transform_1, window_bounds = array<i64: 24, 384>}, {pipeline_mode = #tpu.pipeline_mode<synchronous>, transform_indices = @transform_2, window_bounds = array<i64: 384, 128>}, {transform_indices = @transform_3, window_bounds = array<i64: 8, 128>}]} {
    %c0 = arith.constant 0 : index
    %c0_0 = arith.constant 0 : index
    %0 = vector.load %arg1[%c0, %c0_0] : memref<8x24xf32, #tpu.memory_space<vmem>>, vector<8x24xf32>
    %c0_1 = arith.constant 0 : index
    %c0_2 = arith.constant 0 : index
    %1 = vector.load %arg2[%c0_1, %c0_2] : memref<24x384xf32, #tpu.memory_space<vmem>>, vector<24x384xf32>
    %cst = arith.constant dense<0.000000e+00> : vector<8x384xf32>
    %2 = tpu.matmul %0, %1, %cst {dimension_numbers = #tpu.dot_dimension_numbers<[1], [0], [0], [1], [0, 0, 1, 1], [], []>} : vector<8x24xf32>, vector<24x384xf32>, vector<8x384xf32> -> vector<8x384xf32>
    %cst_3 = arith.constant 0.000000e+00 : f32
    %cst_4 = arith.constant 6.000000e+00 : f32
    %3 = vector.broadcast %cst_3 : f32 to vector<8x384xf32>
    %4 = arith.maximumf %3, %2 : vector<8x384xf32>
    %5 = vector.broadcast %cst_4 : f32 to vector<8x384xf32>
    %6 = arith.minimumf %5, %4 : vector<8x384xf32>
    %c0_5 = arith.constant 0 : index
    %c0_6 = arith.constant 0 : index
    %7 = vector.load %arg3[%c0_5, %c0_6] : memref<384x128xf32, #tpu.memory_space<vmem>>, vector<384x128xf32>
    %cst_7 = arith.constant dense<0.000000e+00> : vector<8x128xf32>
    %8 = tpu.matmul %6, %7, %cst_7 {dimension_numbers = #tpu.dot_dimension_numbers<[1], [0], [0], [1], [0, 0, 1, 1], [], []>} : vector<8x384xf32>, vector<384x128xf32>, vector<8x128xf32> -> vector<8x128xf32>
    %9 = tpu.iota {dimensions = array<i32: 1>} : vector<1x128xi32>
    %10 = math.tanh %8 : vector<8x128xf32>
    %cst_8 = arith.constant 2.000000e+00 : f32
    %11 = vector.broadcast %cst_8 : f32 to vector<8x128xf32>
    %12 = arith.mulf %11, %10 : vector<8x128xf32>
    %cst_9 = arith.constant 0.000000e+00 : f32
    %13 = vector.broadcast %cst_9 : f32 to vector<8x128xf32>
    %14 = arith.maximumf %8, %13 : vector<8x128xf32>
    %15 = math.absf %8 : vector<8x128xf32>
    %cst_10 = arith.constant 0.000000e+00 : f32
    %16 = vector.broadcast %cst_10 : f32 to vector<8x128xf32>
    %17 = arith.subf %16, %15 : vector<8x128xf32>
    %18 = math.exp %17 : vector<8x128xf32>
    %19 = math.log1p %18 : vector<8x128xf32>
    %20 = arith.addf %14, %19 : vector<8x128xf32>
    %cst_11 = arith.constant 1.000000e-03 : f32
    %21 = vector.broadcast %cst_11 : f32 to vector<8x128xf32>
    %22 = arith.addf %20, %21 : vector<8x128xf32>
    %c4_i32 = arith.constant 4 : i32
    %23 = vector.broadcast %c4_i32 : i32 to vector<1x128xi32>
    %24 = arith.cmpi slt, %9, %23 : vector<1x128xi32>
    %c8_i32 = arith.constant 8 : i32
    %25 = vector.broadcast %c8_i32 : i32 to vector<1x128xi32>
    %26 = arith.cmpi slt, %9, %25 : vector<1x128xi32>
    %27 = vector.shape_cast %26 : vector<1x128xi1> to vector<1x128xi1>
    %28 = vector.broadcast %27 : vector<1x128xi1> to vector<8x128xi1>
    %29 = arith.select %28, %22, %8 : vector<8x128xi1>, vector<8x128xf32>
    %30 = vector.shape_cast %24 : vector<1x128xi1> to vector<1x128xi1>
    %31 = vector.broadcast %30 : vector<1x128xi1> to vector<8x128xi1>
    %32 = arith.select %31, %12, %29 : vector<8x128xi1>, vector<8x128xf32>
    %c0_12 = arith.constant 0 : index
    %c0_13 = arith.constant 0 : index
    %33 = vector.load %arg4[%c0_12, %c0_13] : memref<8x128xf32, #tpu.memory_space<vmem>>, vector<8x128xf32>
    tpu.vector_store %arg4[%c0_12, %c0_13], %32 {strides = array<i32>} : memref<8x128xf32, #tpu.memory_space<vmem>>, vector<8x128xf32>,
    return
  }
  func.func @transform_0(%arg0: i32) -> (i32, i32) {
    %c0_i32 = arith.constant 0 : i32
    %c0_i32_0 = arith.constant 0 : i32
    return %arg0, %c0_i32 : i32, i32
  }
  func.func @transform_1(%arg0: i32) -> (i32, i32) {
    %c0_i32 = arith.constant 0 : i32
    %c0_i32_0 = arith.constant 0 : i32
    %c0_i32_1 = arith.constant 0 : i32
    return %c0_i32, %c0_i32_0 : i32, i32
  }
  func.func @transform_2(%arg0: i32) -> (i32, i32) {
    %c0_i32 = arith.constant 0 : i32
    %c0_i32_0 = arith.constant 0 : i32
    %c0_i32_1 = arith.constant 0 : i32
    return %c0_i32, %c0_i32_0 : i32, i32
  }
  func.func @transform_3(%arg0: i32) -> (i32, i32) {
    %c0_i32 = arith.constant 0 : i32
    %c0_i32_0 = arith.constant 0 : i32
    return %arg0, %c0_i32 : i32, i32
  }
}

</mosaic_0001>

<bundles_post_ra>
// kernel: tpu_custom_call.1
= control target key start
LH: loop header
LB: loop body
LE: loop exit
PB: predicated region body
PF: predicated region fallthrough
CT: control target
= control target key end

     0   :  { %8 = vsyncpa [#allocation3], 0  ;;  %s462_s0 = inlined_call_operand.hbm [shape: f32[8,24], index: 0, kind: input, shape index: {}]   ;;  %s463_s1 = inlined_call_operand.hbm [shape: f32[24,384], index: 1, kind: input, shape index: {}]   ;;  %s464_s2 = inlined_call_operand.hbm [shape: f32[384,128], index: 2, kind: input, shape index: {}]   ;;  %s465_s3 = inlined_call_operand.hbm [shape: f32[8,128], index: 3, kind: output, shape index: {}]  }
   0x1   :  { %9 = vsyncpa [#allocation6], 0  ;;  %s26_s14 = sshll.u32 %s463_s1, 4  ;;  %s27_s14 = int_to_ptr.hbm [resolvable:$true] %s26_s14 }
   0x2   :  { %10 = vsyncpa [#allocation4], 0  ;;  %s414_s15 = smov [#allocation5]   ;;  %s16_s19 = sshll.u32 %s462_s0, 4  ;;  %s17_s19 = int_to_ptr.hbm [resolvable:$true] %s16_s19 }
   0x3   :  { %s28_s16 = sshll.u32 %s414_s15, 4  ;;  %s415_s20 = smov 384   ;;  %s29_s16 = int_to_ptr.vmem [resolvable:$true] %s28_s16 }
   0x4   :  { %s416_s21 = smov 24   ;;  %s417_s22 = smov [#allocation2]  }
   0x5   :  { %34 = dma.hbm_to_vmem [thread:$0]  %s27_s14, 1152, %s29_s16, [#allocation6], %s415_s20, %s415_s20, %s416_s21  }
   0x6   :  { %s18_s23 = sshll.u32 %s417_s22, 4  ;;  %s39_s26 = sshll.u32 %s464_s2, 4  ;;  %s19_s23 = int_to_ptr.vmem [resolvable:$true] %s18_s23  ;;  %s40_s26 = int_to_ptr.hbm [resolvable:$true] %s39_s26 }
   0x7   :  { %21 = dma.hbm_to_vmem [thread:$0]  %s17_s19, 128, %s19_s23, [#allocation3]  }
   0x8   :  { %s418_s1 = smov [#allocation7]   ;;  %s419_s28 = smov 128  }
   0x9   :  { %s41_s27 = sshll.u32 %s418_s1, 4  ;;  %s420_s29 = smov 8   ;;  %s42_s27 = int_to_ptr.vmem [resolvable:$true] %s41_s27 }
   0xa   :  { %47 = dma.hbm_to_vmem [thread:$0]  %s40_s26, 6144, %s42_s27, [#allocation6], %s419_s28, %s419_s28, %s420_s29  }
   0xb   :  { %408 = dma.done.wait [#allocation3], 128  }
   0xc   :  { %409 = vsyncadd [#allocation3], 4294967168 }
   0xd   :  { %410 = dma.done.wait [#allocation6], 7296  }
   0xe   :  { %411 = vsyncadd [#allocation6], 4294960000  ;;  %v67_v0 = vld [vmem:[#allocation5 + $0x30] sm:$0xff]  ;;  %v64_v1 = vld [vmem:[#allocation5 + $0x18] sm:$0xff]  ;;  %vm70_vm0 = vcmask 195584   ;;  %s421_s0 = smov [#allocation8]  }
   0xf   :  { %87 = vmatpush.msra.mxu2 %v67_v0  ;;  %v61_v2 = vld [vmem:[#allocation5] sm:$0xff]  ;;  %v451_v3 = vld [vmem:[#allocation2] sm:$0xff]  ;;  %v153_v7 = vld [vmem:[#allocation7 + $0x68] sm:$0xff]  ;;  %s282_s2 = sshll.u32 %s421_s0, 4  ;;  %s284_s5 = sshll.u32 %s465_s3, 4  ;;  %s283_s2 = int_to_ptr.vmem [resolvable:$true] %s282_s2  ;;  %s285_s5 = int_to_ptr.hbm [resolvable:$true] %s284_s5 }
  0x10   :  { %v155_v4 = vld [vmem:[#allocation7 + $0x78] sm:$0xff]  ;;  %v154_v5 = vld [vmem:[#allocation7 + $0x70] sm:$0xff]  ;;  %v152_v11 = vld [vmem:[#allocation7 + $0x60] sm:$0xff] }
  0x11   :  { %88 = vmatpush.msra.mxu2 %v64_v1  ;;  %v68_v6 = vld [vmem:[#allocation5 + $0x38] sm:$0xff]  ;;  %188 = vmatpush.msra.mxu3 %v155_v4  ;;  %v171_v8 = vld [vmem:[#allocation7 + $0xf8] sm:$0xff]  ;;  %v62_v12 = vld [vmem:[#allocation5 + $0x8] sm:$0xff] }
  0x12   :  { %v65_v9 = vld [vmem:[#allocation5 + $0x20] sm:$0xff]  ;;  %v170_v10 = vld [vmem:[#allocation7 + $0xf0] sm:$0xff]  ;;  %208 = vmatpush.msra.mxu0 %v171_v8  ;;  %v169_v13 = vld [vmem:[#allocation7 + $0xe8] sm:$0xff] }
  0x13   :  { %89 = vmatpush.msra.mxu2 %v61_v2  ;;  %189 = vmatpush.msra.mxu3 %v154_v5  ;;  %v187_v14 = vld [vmem:[#allocation7 + $0x178] sm:$0xff]  ;;  %v168_v17 = vld [vmem:[#allocation7 + $0xe0] sm:$0xff]  ;;  %v186_v18 = vld [vmem:[#allocation7 + $0x170] sm:$0xff] }
  0x14   :  { %295 = vmatmul.msk.f32.vlgmr.msra.gmra.mxu2 %vm70_vm0, %v451_v3  ;;  %v69_v15 = vld [vmem:[#allocation5 + $0x40] sm:$0xff]  ;;  %209 = vmatpush.msra.mxu0 %v170_v10  ;;  %v150_v19 = vld [vmem:[#allocation7 + $0x50] sm:$0xff]  ;;  %v66_v20 = vld [vmem:[#allocation5 + $0x28] sm:$0xff] }
  0x15   :  { %107 = vmatpush.msrb.mxu2 %v68_v6  ;;  %190 = vmatpush.msra.mxu3 %v153_v7  ;;  %v151_v16 = vld [vmem:[#allocation7 + $0x58] sm:$0xff]  ;;  %v149_v22 = vld [vmem:[#allocation7 + $0x48] sm:$0xff]  ;;  %v166_v25 = vld [vmem:[#allocation7 + $0xd0] sm:$0xff] }
  0x16   :  { %228 = vmatpush.msra.mxu1 %v187_v14  ;;  %210 = vmatpush.msra.mxu0 %v169_v13  ;;  %v167_v21 = vld [vmem:[#allocation7 + $0xd8] sm:$0xff]  ;;  %v185_v23 = vld [vmem:[#allocation7 + $0x168] sm:$0xff]  ;;  %v148_v26 = vld [vmem:[#allocation7 + $0x40] sm:$0xff] }
  0x17   :  { %108 = vmatpush.msrb.mxu2 %v65_v9  ;;  %191 = vmatpush.msra.mxu3 %v152_v11  ;;  %v63_v24 = vld [vmem:[#allocation5 + $0x10] sm:$0xff]  ;;  %v184_v27 = vld [vmem:[#allocation7 + $0x160] sm:$0xff]  ;;  %v147_v29 = vld [vmem:[#allocation7 + $0x38] sm:$0xff] }
  0x18   :  { %211 = vmatpush.msra.mxu0 %v168_v17  ;;  %229 = vmatpush.msra.mxu1 %v186_v18  ;;  %v165_v28 = vld [vmem:[#allocation7 + $0xc8] sm:$0xff]  ;;  %v183_v30 = vld [vmem:[#allocation7 + $0x158] sm:$0xff]  ;;  %v164_v31 = vld [vmem:[#allocation7 + $0xc0] sm:$0xff] }
  0x19   :  { %109 = vmatpush.msrb.mxu2 %v62_v12  ;;  %192 = vmatpush.msra.mxu3 %v151_v16  ;;  %v146_v32 = vld [vmem:[#allocation7 + $0x30] sm:$0xff]  ;;  %v163_v33 = vld [vmem:[#allocation7 + $0xb8] sm:$0xff]  ;;  %v145_v34 = vld [vmem:[#allocation7 + $0x28] sm:$0xff] }
  0x1a   :  { %212 = vmatpush.msra.mxu0 %v167_v21  ;;  %230 = vmatpush.msra.mxu1 %v185_v23  ;;  %v144_v35 = vld [vmem:[#allocation7 + $0x20] sm:$0xff]  ;;  %v143_v36 = vld [vmem:[#allocation7 + $0x18] sm:$0xff]  ;;  %v142_v37 = vld [vmem:[#allocation7 + $0x10] sm:$0xff] }
  0x1b   :  { %127 = vmatpush.msra.mxu2 %v69_v15  ;;  %193 = vmatpush.msra.mxu3 %v150_v19  ;;  %v162_v38 = vld [vmem:[#allocation7 + $0xb0] sm:$0xff]  ;;  %v141_v40 = vld [vmem:[#allocation7 + $0x8] sm:$0xff]  ;;  %v140_v43 = vld [vmem:[#allocation7] sm:$0xff]  ;;  %v248_v15 = vlaneseq }
  0x1c   :  { %296 = vmatmul.msk.f32.vlgmr.msrb.gmra.mxu2 %vm70_vm0, %v451_v3  ;;  %213 = vmatpush.msra.mxu0 %v166_v25  ;;  %v182_v39 = vld [vmem:[#allocation7 + $0x150] sm:$0xff]  ;;  %v161_v41 = vld [vmem:[#allocation7 + $0xa8] sm:$0xff]  ;;  %v160_v44 = vld [vmem:[#allocation7 + $0xa0] sm:$0xff] }
  0x1d   :  { %128 = vmatpush.msra.mxu2 %v66_v20  ;;  %194 = vmatpush.msra.mxu3 %v149_v22  ;;  %v181_v42 = vld [vmem:[#allocation7 + $0x148] sm:$0xff]  ;;  %v180_v45 = vld [vmem:[#allocation7 + $0x140] sm:$0xff]  ;;  %v159_v46 = vld [vmem:[#allocation7 + $0x98] sm:$0xff]  ;;  %v249_v20 = vand.u32 127, %v248_v15 }
  0x1e   :  { %231 = vmatpush.msra.mxu1 %v184_v27  ;;  %214 = vmatpush.msra.mxu0 %v165_v28  ;;  %v179_v47 = vld [vmem:[#allocation7 + $0x138] sm:$0xff]  ;;  %v158_v48 = vld [vmem:[#allocation7 + $0x90] sm:$0xff]  ;;  %v157_v50 = vld [vmem:[#allocation7 + $0x88] sm:$0xff] }
  0x1f   :  { %129 = vmatpush.msra.mxu2 %v63_v24  ;;  %195 = vmatpush.msra.mxu3 %v148_v26  ;;  %v178_v49 = vld [vmem:[#allocation7 + $0x130] sm:$0xff]  ;;  %v177_v51 = vld [vmem:[#allocation7 + $0x128] sm:$0xff]  ;;  %v156_v52 = vld [vmem:[#allocation7 + $0x80] sm:$0xff]  ;;  %vm269_vm2 = vcmp.lt.s32.totalorder %v249_v20, 8  ;;  %vm268_vm3 = vcmp.lt.s32.totalorder %v249_v20, 4 }
  0x20   :  { %232 = vmatpush.msra.mxu1 %v183_v30  ;;  %215 = vmatpush.msra.mxu0 %v164_v31  ;;  %v176_v53 = vld [vmem:[#allocation7 + $0x120] sm:$0xff]  ;;  %v175_v54 = vld [vmem:[#allocation7 + $0x118] sm:$0xff]  ;;  %v174_v55 = vld [vmem:[#allocation7 + $0x110] sm:$0xff] }
  0x21   :  { %196 = vmatpush.msra.mxu3 %v147_v29  ;;  %v173_v56 = vld [vmem:[#allocation7 + $0x108] sm:$0xff]  ;;  %v172_v57 = vld [vmem:[#allocation7 + $0x100] sm:$0xff] }
  0x22   :  { %216 = vmatpush.msra.mxu0 %v163_v33  ;;  %233 = vmatpush.msra.mxu1 %v182_v39 }
  0x23   :  { %197 = vmatpush.msra.mxu3 %v146_v32 }
  0x24   :  { %297 = vmatmul.msk.f32.vlgmr.msra.gmra.mxu2 %vm70_vm0, %v451_v3  ;;  %217 = vmatpush.msra.mxu0 %v162_v38 }
  0x25   :  { %198 = vmatpush.msra.mxu3 %v145_v34  ;;  %234 = vmatpush.msra.mxu1 %v181_v42 }
  0x26   :  { %218 = vmatpush.msra.mxu0 %v161_v41 }
  0x27   :  { %199 = vmatpush.msra.mxu3 %v144_v35  ;;  %235 = vmatpush.msra.mxu1 %v180_v45 }
  0x28   :  { %219 = vmatpush.msra.mxu0 %v160_v44 }
  0x29   :  { %200 = vmatpush.msra.mxu3 %v143_v36  ;;  %236 = vmatpush.msra.mxu1 %v179_v47 }
  0x2a   :  { %220 = vmatpush.msra.mxu0 %v159_v46 }
  0x2b   :  { %201 = vmatpush.msra.mxu3 %v142_v37  ;;  %237 = vmatpush.msra.mxu1 %v178_v49 }
  0x2c   :  { %221 = vmatpush.msra.mxu0 %v158_v48 }
  0x2d   :  { %202 = vmatpush.msra.mxu3 %v141_v40  ;;  %238 = vmatpush.msra.mxu1 %v177_v51 }
  0x2e   :  { %222 = vmatpush.msra.mxu0 %v157_v50 }
  0x2f   :  { %203 = vmatpush.msra.mxu3 %v140_v43  ;;  %239 = vmatpush.msra.mxu1 %v176_v53 }
  0x30   :  { %223 = vmatpush.msra.mxu0 %v156_v52 }
  0x31   :  { %240 = vmatpush.msra.mxu1 %v175_v54 }
  0x33   :  { %241 = vmatpush.msra.mxu1 %v174_v55 }
  0x35   :  { %242 = vmatpush.msra.mxu1 %v173_v56 }
  0x37   :  { %243 = vmatpush.msra.mxu1 %v172_v57 }
  0x97   :  { %v91_v58 = vpop.f32.mrf.mxu2 }
  0x98   :  { %v134_v59 = vmax.f32 %v91_v58, 0.0 }
  0x9a   :  { %v137_v60 = vmin.f32 %v134_v59, 6.0 }
  0x9c   :  { %204 = vmatmul.f32.vlgmr.msra.gmra.mxu3 %v137_v60 }
  0x9f   :  { %v111_v61 = vpop.f32.mrf.mxu2 }
  0xa0   :  { %v135_v62 = vmax.f32 %v111_v61, 0.0 }
  0xa2   :  { %v138_v63 = vmin.f32 %v135_v62, 6.0 }
  0xa4   :  { %224 = vmatmul.f32.vlgmr.msra.gmra.mxu0 %v138_v63 }
  0xa7   :  { %v131_v0 = vpop.f32.mrf.mxu2 }
  0xa8   :  { %v136_v1 = vmax.f32 %v131_v0, 0.0 }
  0xaa   :  { %v139_v2 = vmin.f32 %v136_v1, 6.0 }
  0xac   :  { %244 = vmatmul.f32.vlgmr.msra.gmra.mxu1 %v139_v2 }
 0x11f   :  { %v205_v4 = vpop.f32.mrf.mxu3 }
 0x121   :  { %v225_v3 = vpop.f32.mrf.mxu0 }
 0x122   :  { %v226_v5 = vadd.f32 %v225_v3, %v205_v4 }
 0x129   :  { %v245_v6 = vpop.f32.mrf.mxu1 }
 0x12a   :  { %v246_v7 = vadd.f32 %v245_v6, %v226_v5 }
 0x12c   :  { %v253_v8 = vand.u32 2147483647, %v246_v7  ;;  %v252_v21 = vmax.f32 %v246_v7, 0.0 }
 0x12e   :  { %v254_v9 = vsub.f32 0.0, %v253_v8 }
 0x130   :  { %v255_v10 = vmul.f32 1.442695, %v254_v9 }
 0x132   :  { %306 = vpow2.f32 %v255_v10 }
 0x138   :  { %v307_v11 = vpop.eup %306 }
 0x139   :  { %v257_v12 = vadd.f32 1.0, %v307_v11  ;;  %v260_v13 = vmul.f32 -0.5, %v307_v11  ;;  %v263_v16 = vand.u32 2147483647, %v307_v11 }
 0x13b   :  { %308 = vlog2.f32 %v257_v12  ;;  %v261_v14 = vadd.f32 1.0, %v260_v13  ;;  %vm264_vm1 = vcmp.lt.f32.partialorder %v263_v16, 0.0004427343 }
 0x13c   :  { %310 = vtanh.f32 %v246_v7 }
 0x13d   :  { %v262_v19 = vmul.f32 %v307_v11, %v261_v14 }
 0x141   :  { %v309_v17 = vpop.eup %308 }
 0x142   :  { %v259_v18 = vmul.f32 0.6931472, %v309_v17  ;;  %v311_v23 = vpop.eup %310 }
 0x143   :  { %v251_v26 = vmul.f32 2.0, %v311_v23 }
 0x144   :  { %v265_v22 = vsel %vm264_vm1, %v262_v19, %v259_v18 }
 0x145   :  { %v266_v24 = vadd.f32 %v265_v22, %v252_v21 }
 0x147   :  { %v267_v25 = vadd.f32 0.001, %v266_v24 }
 0x149   :  { %v272_v27 = vsel %vm269_vm2, %v267_v25, %v246_v7 }
 0x14a   :  { %v275_v28 = vsel %vm268_vm3, %v251_v26, %v272_v27 }
 0x14b   :  { %276 = vst [vmem:[#allocation8] sm:$0xff] %v275_v28 }
 0x14c   :  { %287 = dma.vmem_to_hbm [thread:$0]  %s283_s2, 128, %s285_s5, [#allocation4]  }
 0x14d   :  { %412 = dma.done.wait [#allocation4], 128  }
 0x14e   :  { %413 = vsyncadd [#allocation4], 4294967168 }
 0x14f   :  { %292 = vsyncpa [#allocation3], 1 }
 0x150   :  { %293 = vsyncpa [#allocation6], 1 }
 0x151   :  { %294 = vsyncpa [#allocation4], 1 }

</bundles_post_ra>
